<compile_context>
chip_gen: v6e
topology: v6e:2x2x1
jax: 0.10.0
libtpu: 0.0.40
codegen_flags: <defaults>
</compile_context>

<pallas_src>
import functools

import jax
import jax.numpy as jnp
import numpy as np
from jax import lax
from jax.experimental import pallas as pl
from jax.experimental.pallas import tpu as pltpu

EPS = 1e-5


def _round_up(n, m):
    return (n + m - 1) // m * m


# ----------------------------------- kernel -----------------------------------

def _bn_train(h, gamma_row, beta_row):
    # BatchNorm1d training forward, two-pass (centered) variance for accuracy:
    #   y = (h - mu) * (gamma * rsqrt(var + eps)) + beta
    mu = jnp.mean(h, axis=0, keepdims=True)
    d = h - mu
    var = jnp.mean(d * d, axis=0, keepdims=True)
    return d * (gamma_row * lax.rsqrt(var + EPS)) + beta_row


def mlp_kernel(x_ref, p_ref, w_ref, o_ref, *, IL, H0, H1, off2, off3, mm_dtype):
    # Packed parameter slab rows (all static slices, f32):
    #   0 bn1_gamma  1 bn1_beta   2 wn_scale1  3 b1
    #   4 bn2_gamma  5 bn2_beta   6 wn_scale2  7 b2
    #   8 bn3_gamma  9 bn3_beta  10 wn_scale3 11 b3
    h = x_ref[...]                                                    # [B, IL] f32

    # Layer 1: BN -> (h @ v1^T) * s1 + b1 -> ReLU
    h = _bn_train(h, p_ref[0:1, :IL], p_ref[1:2, :IL])
    z = lax.dot_general(h.astype(mm_dtype), w_ref[0:H0, :IL],
                        (((1,), (1,)), ((), ())),
                        preferred_element_type=jnp.float32)           # [B, H0]
    h = jnp.maximum(z * p_ref[2:3, :H0] + p_ref[3:4, :H0], 0.0)

    # Layer 2: BN -> (h @ v2^T) * s2 + b2 -> ReLU
    h = _bn_train(h, p_ref[4:5, :H0], p_ref[5:6, :H0])
    z = lax.dot_general(h.astype(mm_dtype), w_ref[off2:off2 + H1, :H0],
                        (((1,), (1,)), ((), ())),
                        preferred_element_type=jnp.float32)           # [B, H1]
    h = jnp.maximum(z * p_ref[6:7, :H1] + p_ref[7:8, :H1], 0.0)

    # Layer 3: BN -> out_features=1 -> VPU multiply + lane (XLU) reduction.
    h = _bn_train(h, p_ref[8:9, :H1], p_ref[9:10, :H1])
    v3 = w_ref[off3:off3 + 1, :H1].astype(jnp.float32)                # [1, H1]
    o_ref[...] = (jnp.sum(h * v3, axis=1, keepdims=True)
                  * p_ref[10:11, 0:1] + p_ref[11:12, 0:1])            # [B, 1]


# ------------------------- one-time parameter packing -------------------------

def pack_params(params, matmul_dtype=jnp.bfloat16):
    """Hoisted out of the per-call path: build the two kernel slabs ONCE.

    Returns a dict with the packed slabs plus static layout metadata.
    """
    H0, IL = params["v1"].shape
    H1 = params["v2"].shape[0]
    P = _round_up(max(IL, H0, H1, 128), 128)

    def row(v):
        v = jnp.asarray(v, jnp.float32).reshape(-1)
        return jnp.pad(v, (0, P - v.size))

    def wn_scale(v, g):
        # Batch-invariant weight-norm scale g / ||v||, always in f32.
        nsq = jnp.sum(jnp.asarray(v, jnp.float32) ** 2, axis=1)
        return jnp.asarray(g, jnp.float32) * lax.rsqrt(nsq)

    rows = [row(params["bn1_gamma"]), row(params["bn1_beta"]),
            row(wn_scale(params["v1"], params["g1"])), row(params["b1"]),
            row(params["bn2_gamma"]), row(params["bn2_beta"]),
            row(wn_scale(params["v2"], params["g2"])), row(params["b2"]),
            row(params["bn3_gamma"]), row(params["bn3_beta"]),
            row(wn_scale(params["v3"], params["g3"])), row(params["b3"])]
    rows += [jnp.zeros((P,), jnp.float32)] * (16 - len(rows))
    pslab = jnp.stack(rows, axis=0)                                   # [16, P]

    # Weight slab: v1 / v2 / v3 stacked along (16-row aligned) sublane offsets.
    off2 = _round_up(H0, 16)
    off3 = off2 + _round_up(H1, 16)
    R = off3 + 16
    wslab = jnp.zeros((R, P), matmul_dtype)
    wslab = wslab.at[0:H0, 0:IL].set(params["v1"].astype(matmul_dtype))
    wslab = wslab.at[off2:off2 + H1, 0:H0].set(params["v2"].astype(matmul_dtype))
    wslab = wslab.at[off3:off3 + 1, 0:H1].set(params["v3"].astype(matmul_dtype))

    return dict(pslab=pslab, wslab=wslab, IL=IL, H0=H0, H1=H1,
                off2=off2, off3=off3, mm_dtype=matmul_dtype)


def make_forward(packed):
    """Build a jitted forward(x) closure over the packed (static) layout."""
    IL, H0, H1 = packed["IL"], packed["H0"], packed["H1"]
    off2, off3 = packed["off2"], packed["off3"]
    mm_dtype = packed["mm_dtype"]
    kernel = functools.partial(mlp_kernel, IL=IL, H0=H0, H1=H1,
                               off2=off2, off3=off3, mm_dtype=mm_dtype)
    vmem = pl.BlockSpec(memory_space=pltpu.MemorySpace.VMEM)

    @jax.jit
    def forward(x, pslab, wslab):
        B = x.shape[0]
        flops = 2 * B * (IL * H0 + H0 * H1 + H1)
        bytes_accessed = (4 * (B * IL + pslab.size + B)
                          + wslab.size * wslab.dtype.itemsize)
        transcendentals = IL + H0 + H1                                # BN rsqrt
        return pl.pallas_call(
            kernel,
            out_shape=jax.ShapeDtypeStruct((B, 1), jnp.float32),
            in_specs=[vmem, vmem, vmem],
            out_specs=vmem,
            cost_estimate=pl.CostEstimate(flops=flops,
                                          transcendentals=transcendentals,
                                          bytes_accessed=bytes_accessed),
        )(x, pslab, wslab)

    return forward


def mlp_forward(x, packed):
    return make_forward(packed)(x, packed["pslab"], packed["wslab"])


# ----------------------------- pure-JAX reference -----------------------------

def _weight_norm_effective(v, g):
    norm = jnp.sqrt(jnp.sum(v * v, axis=1, keepdims=True))
    return (g[:, None] / norm) * v


def reference_forward(x, params):
    w1 = _weight_norm_effective(params["v1"], params["g1"])
    w2 = _weight_norm_effective(params["v2"], params["g2"])
    w3 = _weight_norm_effective(params["v3"], params["g3"])

    def bn(h, gamma, beta):
        mu = jnp.mean(h, axis=0, keepdims=True)
        var = jnp.mean((h - mu) ** 2, axis=0, keepdims=True)
        return (h - mu) / jnp.sqrt(var + EPS) * gamma + beta

    h = bn(x, params["bn1_gamma"], params["bn1_beta"])
    h = jnp.maximum(h @ w1.T + params["b1"], 0.0)
    h = bn(h, params["bn2_gamma"], params["bn2_beta"])
    h = jnp.maximum(h @ w2.T + params["b2"], 0.0)
    h = bn(h, params["bn3_gamma"], params["bn3_beta"])
    return h @ w3.T + params["b3"]


def init_params(key, IL, HL):
    H0, H1 = HL
    ks = jax.random.split(key, 8)
    return {
        "bn1_gamma": jnp.ones((IL,), jnp.float32), "bn1_beta": jnp.zeros((IL,), jnp.float32),
        "bn2_gamma": jnp.ones((H0,), jnp.float32), "bn2_beta": jnp.zeros((H0,), jnp.float32),
        "bn3_gamma": jnp.ones((H1,), jnp.float32), "bn3_beta": jnp.zeros((H1,), jnp.float32),
        "v1": jax.random.normal(ks[0], (H0, IL), jnp.float32) * 0.1,
        "g1": 1.0 + 0.1 * jax.random.normal(ks[1], (H0,), jnp.float32),
        "b1": 0.1 * jax.random.normal(ks[2], (H0,), jnp.float32),
        "v2": jax.random.normal(ks[3], (H1, H0), jnp.float32) * 0.1,
        "g2": 1.0 + 0.1 * jax.random.normal(ks[4], (H1,), jnp.float32),
        "b2": 0.1 * jax.random.normal(ks[5], (H1,), jnp.float32),
        "v3": jax.random.normal(ks[6], (1, H1), jnp.float32) * 0.1,
        "g3": jnp.ones((1,), jnp.float32),
        "b3": 0.1 * jax.random.normal(ks[7], (1,), jnp.float32),
    }


if __name__ == "__main__":
    B, IL, HL = 8, 32, (64, 32)
    key = jax.random.PRNGKey(0)
    kx, kp = jax.random.split(key)
    x = jax.random.normal(kx, (B, IL), jnp.float32)
    params = init_params(kp, IL, HL)
    ref = jax.block_until_ready(reference_forward(x, params))

    # Strict-accuracy path (f32 matmul) — must match the f32 reference tightly.
    packed_f32 = pack_params(params, matmul_dtype=jnp.float32)
    out_f32 = jax.block_until_ready(mlp_forward(x, packed_f32))
    assert out_f32.shape == (B, 1), out_f32.shape
    np.testing.assert_allclose(np.asarray(out_f32), np.asarray(ref),
                               rtol=1e-4, atol=1e-4)

    # Perf path (bf16 MXU operands, f32 stats/scales) — bf16-level tolerance.
    packed_bf16 = pack_params(params, matmul_dtype=jnp.bfloat16)
    out_bf16 = jax.block_until_ready(mlp_forward(x, packed_bf16))
    assert out_bf16.shape == (B, 1), out_bf16.shape
    np.testing.assert_allclose(np.asarray(out_bf16), np.asarray(ref),
                               rtol=2e-2, atol=2e-2)

    print("KERNEL_OK")
</pallas_src>

<mosaic_0001>
module attributes {stable_mosaic.version = 11 : i64} {
  func.func @mlp_kernel(%arg0: memref<8x32xf32, #tpu.memory_space<vmem>>, %arg1: memref<16x128xf32, #tpu.memory_space<vmem>>, %arg2: memref<112x128xf32, #tpu.memory_space<vmem>>, %arg3: memref<8x1xf32, #tpu.memory_space<vmem>>) attributes {dimension_semantics = [], scalar_prefetch = 0 : i64, scratch_operands = 0 : i64, tpu.core_type = #tpu.core_type<tc>} {
    %c0 = arith.constant 0 : index
    %c0_0 = arith.constant 0 : index
    %0 = vector.load %arg0[%c0, %c0_0] : memref<8x32xf32, #tpu.memory_space<vmem>>, vector<8x32xf32>
    %c0_1 = arith.constant 0 : index
    %c0_2 = arith.constant 0 : index
    %1 = vector.load %arg1[%c0_1, %c0_2] : memref<16x128xf32, #tpu.memory_space<vmem>>, vector<1x32xf32>
    %c1 = arith.constant 1 : index
    %c0_3 = arith.constant 0 : index
    %2 = vector.load %arg1[%c1, %c0_3] : memref<16x128xf32, #tpu.memory_space<vmem>>, vector<1x32xf32>
    %cst = arith.constant dense<0.000000e+00> : vector<32xf32>
    %3 = vector.multi_reduction <add>, %0, %cst [0] : vector<8x32xf32> to vector<32xf32>
    %4 = vector.shape_cast %3 : vector<32xf32> to vector<1x32xf32>
    %cst_4 = arith.constant 8.000000e+00 : f32
    %5 = vector.broadcast %cst_4 : f32 to vector<1x32xf32>
    %6 = arith.divf %4, %5 : vector<1x32xf32>
    %7 = vector.broadcast %6 : vector<1x32xf32> to vector<8x32xf32>
    %8 = arith.subf %0, %7 : vector<8x32xf32>
    %9 = arith.mulf %8, %8 : vector<8x32xf32>
    %cst_5 = arith.constant dense<0.000000e+00> : vector<32xf32>
    %10 = vector.multi_reduction <add>, %9, %cst_5 [0] : vector<8x32xf32> to vector<32xf32>
    %11 = vector.shape_cast %10 : vector<32xf32> to vector<1x32xf32>
    %cst_6 = arith.constant 8.000000e+00 : f32
    %12 = vector.broadcast %cst_6 : f32 to vector<1x32xf32>
    %13 = arith.divf %11, %12 : vector<1x32xf32>
    %cst_7 = arith.constant 9.99999974E-6 : f32
    %14 = vector.broadcast %cst_7 : f32 to vector<1x32xf32>
    %15 = arith.addf %13, %14 : vector<1x32xf32>
    %16 = math.rsqrt %15 : vector<1x32xf32>
    %17 = arith.mulf %1, %16 : vector<1x32xf32>
    %18 = vector.broadcast %17 : vector<1x32xf32> to vector<8x32xf32>
    %19 = arith.mulf %8, %18 : vector<8x32xf32>
    %20 = vector.broadcast %2 : vector<1x32xf32> to vector<8x32xf32>
    %21 = arith.addf %19, %20 : vector<8x32xf32>
    %c0_8 = arith.constant 0 : index
    %c0_9 = arith.constant 0 : index
    %22 = vector.load %arg2[%c0_8, %c0_9] : memref<112x128xf32, #tpu.memory_space<vmem>>, vector<64x32xf32>
    %cst_10 = arith.constant dense<0.000000e+00> : vector<8x64xf32>
    %23 = tpu.matmul %21, %22, %cst_10 {dimension_numbers = #tpu.dot_dimension_numbers<[1], [1], [0], [0], [0, 0, 1, 0], [], []>} : vector<8x32xf32>, vector<64x32xf32>, vector<8x64xf32> -> vector<8x64xf32>
    %c2 = arith.constant 2 : index
    %c0_11 = arith.constant 0 : index
    %24 = vector.load %arg1[%c2, %c0_11] : memref<16x128xf32, #tpu.memory_space<vmem>>, vector<1x64xf32>
    %25 = vector.broadcast %24 : vector<1x64xf32> to vector<8x64xf32>
    %26 = arith.mulf %23, %25 : vector<8x64xf32>
    %c3 = arith.constant 3 : index
    %c0_12 = arith.constant 0 : index
    %27 = vector.load %arg1[%c3, %c0_12] : memref<16x128xf32, #tpu.memory_space<vmem>>, vector<1x64xf32>
    %28 = vector.broadcast %27 : vector<1x64xf32> to vector<8x64xf32>
    %29 = arith.addf %26, %28 : vector<8x64xf32>
    %cst_13 = arith.constant 0.000000e+00 : f32
    %30 = vector.broadcast %cst_13 : f32 to vector<8x64xf32>
    %31 = arith.maximumf %29, %30 : vector<8x64xf32>
    %c4 = arith.constant 4 : index
    %c0_14 = arith.constant 0 : index
    %32 = vector.load %arg1[%c4, %c0_14] : memref<16x128xf32, #tpu.memory_space<vmem>>, vector<1x64xf32>
    %c5 = arith.constant 5 : index
    %c0_15 = arith.constant 0 : index
    %33 = vector.load %arg1[%c5, %c0_15] : memref<16x128xf32, #tpu.memory_space<vmem>>, vector<1x64xf32>
    %cst_16 = arith.constant dense<0.000000e+00> : vector<64xf32>
    %34 = vector.multi_reduction <add>, %31, %cst_16 [0] : vector<8x64xf32> to vector<64xf32>
    %35 = vector.shape_cast %34 : vector<64xf32> to vector<1x64xf32>
    %cst_17 = arith.constant 8.000000e+00 : f32
    %36 = vector.broadcast %cst_17 : f32 to vector<1x64xf32>
    %37 = arith.divf %35, %36 : vector<1x64xf32>
    %38 = vector.broadcast %37 : vector<1x64xf32> to vector<8x64xf32>
    %39 = arith.subf %31, %38 : vector<8x64xf32>
    %40 = arith.mulf %39, %39 : vector<8x64xf32>
    %cst_18 = arith.constant dense<0.000000e+00> : vector<64xf32>
    %41 = vector.multi_reduction <add>, %40, %cst_18 [0] : vector<8x64xf32> to vector<64xf32>
    %42 = vector.shape_cast %41 : vector<64xf32> to vector<1x64xf32>
    %cst_19 = arith.constant 8.000000e+00 : f32
    %43 = vector.broadcast %cst_19 : f32 to vector<1x64xf32>
    %44 = arith.divf %42, %43 : vector<1x64xf32>
    %cst_20 = arith.constant 9.99999974E-6 : f32
    %45 = vector.broadcast %cst_20 : f32 to vector<1x64xf32>
    %46 = arith.addf %44, %45 : vector<1x64xf32>
    %47 = math.rsqrt %46 : vector<1x64xf32>
    %48 = arith.mulf %32, %47 : vector<1x64xf32>
    %49 = vector.broadcast %48 : vector<1x64xf32> to vector<8x64xf32>
    %50 = arith.mulf %39, %49 : vector<8x64xf32>
    %51 = vector.broadcast %33 : vector<1x64xf32> to vector<8x64xf32>
    %52 = arith.addf %50, %51 : vector<8x64xf32>
    %c64 = arith.constant 64 : index
    %c0_21 = arith.constant 0 : index
    %53 = vector.load %arg2[%c64, %c0_21] : memref<112x128xf32, #tpu.memory_space<vmem>>, vector<32x64xf32>
    %cst_22 = arith.constant dense<0.000000e+00> : vector<8x32xf32>
    %54 = tpu.matmul %52, %53, %cst_22 {dimension_numbers = #tpu.dot_dimension_numbers<[1], [1], [0], [0], [0, 0, 1, 0], [], []>} : vector<8x64xf32>, vector<32x64xf32>, vector<8x32xf32> -> vector<8x32xf32>
    %c6 = arith.constant 6 : index
    %c0_23 = arith.constant 0 : index
    %55 = vector.load %arg1[%c6, %c0_23] : memref<16x128xf32, #tpu.memory_space<vmem>>, vector<1x32xf32>
    %56 = vector.broadcast %55 : vector<1x32xf32> to vector<8x32xf32>
    %57 = arith.mulf %54, %56 : vector<8x32xf32>
    %c7 = arith.constant 7 : index
    %c0_24 = arith.constant 0 : index
    %58 = vector.load %arg1[%c7, %c0_24] : memref<16x128xf32, #tpu.memory_space<vmem>>, vector<1x32xf32>
    %59 = vector.broadcast %58 : vector<1x32xf32> to vector<8x32xf32>
    %60 = arith.addf %57, %59 : vector<8x32xf32>
    %cst_25 = arith.constant 0.000000e+00 : f32
    %61 = vector.broadcast %cst_25 : f32 to vector<8x32xf32>
    %62 = arith.maximumf %60, %61 : vector<8x32xf32>
    %c8 = arith.constant 8 : index
    %c0_26 = arith.constant 0 : index
    %63 = vector.load %arg1[%c8, %c0_26] : memref<16x128xf32, #tpu.memory_space<vmem>>, vector<1x32xf32>
    %c9 = arith.constant 9 : index
    %c0_27 = arith.constant 0 : index
    %64 = vector.load %arg1[%c9, %c0_27] : memref<16x128xf32, #tpu.memory_space<vmem>>, vector<1x32xf32>
    %cst_28 = arith.constant dense<0.000000e+00> : vector<32xf32>
    %65 = vector.multi_reduction <add>, %62, %cst_28 [0] : vector<8x32xf32> to vector<32xf32>
    %66 = vector.shape_cast %65 : vector<32xf32> to vector<1x32xf32>
    %cst_29 = arith.constant 8.000000e+00 : f32
    %67 = vector.broadcast %cst_29 : f32 to vector<1x32xf32>
    %68 = arith.divf %66, %67 : vector<1x32xf32>
    %69 = vector.broadcast %68 : vector<1x32xf32> to vector<8x32xf32>
    %70 = arith.subf %62, %69 : vector<8x32xf32>
    %71 = arith.mulf %70, %70 : vector<8x32xf32>
    %cst_30 = arith.constant dense<0.000000e+00> : vector<32xf32>
    %72 = vector.multi_reduction <add>, %71, %cst_30 [0] : vector<8x32xf32> to vector<32xf32>
    %73 = vector.shape_cast %72 : vector<32xf32> to vector<1x32xf32>
    %cst_31 = arith.constant 8.000000e+00 : f32
    %74 = vector.broadcast %cst_31 : f32 to vector<1x32xf32>
    %75 = arith.divf %73, %74 : vector<1x32xf32>
    %cst_32 = arith.constant 9.99999974E-6 : f32
    %76 = vector.broadcast %cst_32 : f32 to vector<1x32xf32>
    %77 = arith.addf %75, %76 : vector<1x32xf32>
    %78 = math.rsqrt %77 : vector<1x32xf32>
    %79 = arith.mulf %63, %78 : vector<1x32xf32>
    %80 = vector.broadcast %79 : vector<1x32xf32> to vector<8x32xf32>
    %81 = arith.mulf %70, %80 : vector<8x32xf32>
    %82 = vector.broadcast %64 : vector<1x32xf32> to vector<8x32xf32>
    %83 = arith.addf %81, %82 : vector<8x32xf32>
    %c96 = arith.constant 96 : index
    %c0_33 = arith.constant 0 : index
    %84 = vector.load %arg2[%c96, %c0_33] : memref<112x128xf32, #tpu.memory_space<vmem>>, vector<1x32xf32>
    %85 = vector.broadcast %84 : vector<1x32xf32> to vector<8x32xf32>
    %86 = arith.mulf %83, %85 : vector<8x32xf32>
    %cst_34 = arith.constant dense<0.000000e+00> : vector<8xf32>
    %87 = vector.multi_reduction <add>, %86, %cst_34 [1] : vector<8x32xf32> to vector<8xf32>
    %88 = vector.shape_cast %87 : vector<8xf32> to vector<8x1xf32>
    %c10 = arith.constant 10 : index
    %c0_35 = arith.constant 0 : index
    %89 = vector.load %arg1[%c10, %c0_35] : memref<16x128xf32, #tpu.memory_space<vmem>>, vector<1x1xf32>
    %90 = vector.broadcast %89 : vector<1x1xf32> to vector<8x1xf32>
    %91 = arith.mulf %88, %90 : vector<8x1xf32>
    %c11 = arith.constant 11 : index
    %c0_36 = arith.constant 0 : index
    %92 = vector.load %arg1[%c11, %c0_36] : memref<16x128xf32, #tpu.memory_space<vmem>>, vector<1x1xf32>
    %93 = vector.broadcast %92 : vector<1x1xf32> to vector<8x1xf32>
    %94 = arith.addf %91, %93 : vector<8x1xf32>
    %c0_37 = arith.constant 0 : index
    %c0_38 = arith.constant 0 : index
    %95 = vector.load %arg3[%c0_37, %c0_38] : memref<8x1xf32, #tpu.memory_space<vmem>>, vector<8x1xf32>
    tpu.vector_store %arg3[%c0_37, %c0_38], %94 {strides = array<i32>} : memref<8x1xf32, #tpu.memory_space<vmem>>, vector<8x1xf32>,
    return
  }
}

</mosaic_0001>

<bundles_post_ra>
// kernel: forward.1
= control target key start
LH: loop header
LB: loop body
LE: loop exit
PB: predicated region body
PF: predicated region fallthrough
CT: control target
= control target key end

     0   :  { %8 = vsyncpa [#allocation3], 0  ;;  %s629_s0 = inlined_call_operand.hbm [shape: f32[8,32], index: 0, kind: input, shape index: {}]   ;;  %s630_s1 = inlined_call_operand.hbm [shape: f32[16,128], index: 1, kind: input, shape index: {}]   ;;  %s631_s2 = inlined_call_operand.hbm [shape: f32[112,128], index: 2, kind: input, shape index: {}]   ;;  %s632_s3 = inlined_call_operand.vmem [shape: f32[8,1], index: 3, kind: output, shape index: {}]  }
   0x1   :  { %9 = vsyncpa [#allocation5], 0  ;;  %s550_s12 = smov [#allocation4]  }
   0x2   :  { %s25_s13 = sshll.u32 %s550_s12, 4  ;;  %s26_s13 = int_to_ptr.vmem [resolvable:$true] %s25_s13 }
   0x3   :  { %s494_s14 = scalar_lea.vmem %s26_s13, 256  ;;  %p499_p1 = scmp.lt.s32.totalorder %s26_s13, %s26_s13 }
   0x4   :  { %p495_p0 = scmp.ne.s32.totalorder %s26_s13, %s494_s14  ;;  %p500_p2 = scmp.lt.s32.totalorder %s494_s14, %s494_s14 }
   0x6   :  { %p501_p3 = por %p500_p2, %p499_p1 }
   0x8   :  { %p502_p4 = pnand %p501_p3, %p495_p0 }
   0xa   :  { %505 = shalt.err (!%p502_p4)
}
   0xb   :  { %s551_s15 = smov 128   ;;  %s552_s16 = smov 8  }
   0xc   :  { %31 = dma.hbm_to_vmem [thread:$0]  %s630_s1, 256, %s26_s13, [#allocation5], %s551_s15, %s551_s15, %s552_s16  }
   0xd   :  { %s553_s19 = smov [#allocation2]   ;;  %s554_s21 = smov [#allocation6]  }
   0xe   :  { %s16_s20 = sshll.u32 %s553_s19, 4  ;;  %s37_s22 = sshll.u32 %s554_s21, 4  ;;  %s17_s20 = int_to_ptr.vmem [resolvable:$true] %s16_s20  ;;  %s38_s22 = int_to_ptr.vmem [resolvable:$true] %s37_s22 }
   0xf   :  { %s514_s23 = scalar_lea.vmem %s17_s20, 128  ;;  %p519_p6 = scmp.lt.s32.totalorder %s17_s20, %s17_s20 }
  0x10   :  { %p515_p5 = scmp.ne.s32.totalorder %s17_s20, %s514_s23  ;;  %p520_p7 = scmp.lt.s32.totalorder %s514_s23, %s514_s23 }
  0x12   :  { %p521_p8 = por %p520_p7, %p519_p6 }
  0x14   :  { %p522_p9 = pnand %p521_p8, %p515_p5 }
  0x16   :  { %525 = shalt.err (!%p522_p9)
}
  0x17   :  { %19 = dma.hbm_to_vmem [thread:$0]  %s629_s0, 128, %s17_s20, [#allocation3]  }
  0x18   :  { %s534_s26 = scalar_lea.vmem %s38_s22, 1792  ;;  %p539_p11 = scmp.lt.s32.totalorder %s38_s22, %s38_s22 }
  0x19   :  { %p535_p10 = scmp.ne.s32.totalorder %s38_s22, %s534_s26  ;;  %p540_p12 = scmp.lt.s32.totalorder %s534_s26, %s534_s26 }
  0x1b   :  { %p541_p13 = por %p540_p12, %p539_p11 }
  0x1d   :  { %p542_p0 = pnand %p541_p13, %p535_p10 }
  0x1f   :  { %545 = shalt.err (!%p542_p0)
}
  0x20   :  { %43 = dma.hbm_to_vmem [thread:$0]  %s631_s2, 1792, %s38_s22, [#allocation5], %s551_s15, %s551_s15, %s552_s16  }
  0x21   :  { %546 = dma.done.wait [#allocation3], 128  }
  0x22   :  { %547 = vsyncadd [#allocation3], 4294967168 }
  0x23   :  { %548 = dma.done.wait [#allocation5], 2048  }
  0x24   :  { %549 = vsyncadd [#allocation5], 4294965248  ;;  %v555_v0 = vmov 0.0   ;;  %vm556_vm0 = vmmov 0   ;;  %vm56_vm1 = vcmask 261120   ;;  %v96_v1 = vld [vmem:[#allocation6 + $0x38] sm:$0xff]  ;;  %v79_v29 = vlaneseq }
  0x25   :  { %443 = vmatprep.subr.mxu0 %v555_v0  ;;  %459 = vmatprep.mubr.msk.f32.mxu0 %vm556_vm0, %v555_v0  ;;  %v95_v2 = vld [vmem:[#allocation6 + $0x30] sm:$0xff]  ;;  %v53_v3 = vld [vmem:[#allocation2] sm:$0xff]  ;;  %v93_v9 = vld [vmem:[#allocation6 + $0x20] sm:$0xff]  ;;  %vm209_vm2 = vcmask 523264   ;;  %vm397_vm3 = vcmask 7168  }
  0x26   :  { %462 = vmatprep.subr.mxu1 %v555_v0  ;;  %470 = vmatprep.mubr.msk.f32.mxu1 %vm556_vm0, %v555_v0  ;;  %v57_v4 = vsel %vm56_vm1, %v53_v3, 0.0  ;;  %v94_v6 = vld [vmem:[#allocation6 + $0x28] sm:$0xff]  ;;  %v92_v12 = vld [vmem:[#allocation6 + $0x18] sm:$0xff]  ;;  %v91_v15 = vld [vmem:[#allocation6 + $0x10] sm:$0xff]  ;;  %v80_v30 = vshrl.u32 %v79_v29, 7 }
  0x27   :  { %444 = vmatpush3.xpose.msk.msra.mxu0 %vm56_vm1, %v96_v1  ;;  %v58_v5 = vrot.slane %v57_v4, 4  ;;  %v90_v18 = vld [vmem:[#allocation6 + $0x8] sm:$0xff]  ;;  %v89_v22 = vld [vmem:[#allocation6] sm:$0xff]  ;;  %v54_v31 = vld [vmem:[#allocation4] sm:$0x1] }
  0x28   :  { %445 = vmatprep.subr.mxu0 %v555_v0  ;;  %v607_v32 = vsub.s32 0, %v80_v30  ;;  %v405_v36 = vld [vmem:[#allocation4 + $0x1] ss:$0 sm:$0xff]  ;;  %v244_v39 = vld [vmem:[#allocation6 + $0x58] sm:$0xff]  ;;  %v242_v41 = vld [vmem:[#allocation6 + $0x48] sm:$0xff] }
  0x29   :  { %v59_v7 = vadd.f32 %v58_v5, %v57_v4  ;;  %463 = vmatpush3.xpose.msk.msra.mxu1 %vm209_vm2, %v244_v39  ;;  %v243_v40 = vld [vmem:[#allocation6 + $0x50] sm:$0xff]  ;;  %v241_v42 = vld [vmem:[#allocation6 + $0x40] sm:$0xff]  ;;  %v343_v39 = vld [vmem:[#allocation4 + $0x8] sm:$0x1] }
  0x2a   :  { %464 = vmatprep.subr.mxu1 %v555_v0  ;;  %v415_v43 = vld [vmem:[#allocation4 + $0x2] ss:$0 sm:$0xff]  ;;  %v416_v45 = vld [vmem:[#allocation4 + $0x3] ss:$0 sm:$0xff]  ;;  %v207_v5 = vld [vmem:[#allocation4 + $0x4] sm:$0x1] }
  0x2b   :  { %446 = vmatpush3.xpose.msk.msra.mxu0 %vm56_vm1, %v95_v2  ;;  %v60_v8 = vrot.slane %v59_v7, 2 }
  0x2c   :  { %447 = vmatprep.subr.mxu0 %v555_v0 }
  0x2d   :  { %v61_v10 = vadd.f32 %v60_v8, %v59_v7  ;;  %465 = vmatpush3.xpose.msk.msra.mxu1 %vm209_vm2, %v243_v40 }
  0x2e   :  { %466 = vmatprep.subr.mxu1 %v555_v0 }
  0x2f   :  { %448 = vmatpush3.xpose.msk.msra.mxu0 %vm56_vm1, %v94_v6  ;;  %v62_v11 = vrot.slane %v61_v10, 1 }
  0x30   :  { %449 = vmatprep.subr.mxu0 %v555_v0 }
  0x31   :  { %v63_v13 = vadd.f32 %v62_v11, %v61_v10  ;;  %467 = vmatpush3.xpose.msk.msra.mxu1 %vm209_vm2, %v242_v41 }
  0x32   :  { %468 = vmatprep.subr.mxu1 %v555_v0 }
  0x33   :  { %450 = vmatpush3.xpose.msk.msra.mxu0 %vm56_vm1, %v93_v9  ;;  %v65_v14 = vmul.f32 0.125, %v63_v13  ;;  %v417_v9 = vld [vmem:[#allocation4 + $0x5] ss:$0 sm:$0xff] }
  0x34   :  { %451 = vmatprep.subr.mxu0 %v555_v0 }
  0x35   :  { %v66_v16 = vsub.f32 %v53_v3, %v65_v14  ;;  %469 = vmatpush3.xpose.msk.msra.mxu1 %vm209_vm2, %v241_v42  ;;  %v424_v14 = vld [vmem:[#allocation4 + $0x7] ss:$0 sm:$0xff] }
  0x37   :  { %452 = vmatpush3.xpose.msk.msra.mxu0 %vm56_vm1, %v92_v12  ;;  %v67_v17 = vmul.f32 %v66_v16, %v66_v16  ;;  %v423_v12 = vld [vmem:[#allocation4 + $0x6] ss:$0 sm:$0xff] }
  0x38   :  { %453 = vmatprep.subr.mxu0 %v555_v0 }
  0x39   :  { %v68_v19 = vsel %vm56_vm1, %v67_v17, 0.0 }
  0x3a   :  { %v69_v20 = vrot.slane %v68_v19, 4 }
  0x3b   :  { %454 = vmatpush3.xpose.msk.msra.mxu0 %vm56_vm1, %v91_v15 }
  0x3c   :  { %455 = vmatprep.subr.mxu0 %v555_v0  ;;  %v70_v21 = vadd.f32 %v69_v20, %v68_v19 }
  0x3e   :  { %v71_v23 = vrot.slane %v70_v21, 2 }
  0x3f   :  { %456 = vmatpush3.xpose.msk.msra.mxu0 %vm56_vm1, %v90_v18 }
  0x40   :  { %457 = vmatprep.subr.mxu0 %v555_v0  ;;  %v72_v24 = vadd.f32 %v71_v23, %v70_v21 }
  0x42   :  { %v73_v25 = vrot.slane %v72_v24, 1 }
  0x43   :  { %458 = vmatpush3.xpose.msk.msra.mxu0 %vm56_vm1, %v89_v22 }
  0x44   :  { %v74_v26 = vadd.f32 %v73_v25, %v72_v24 }
  0x46   :  { %v75_v27 = vmul.f32 0.125, %v74_v26 }
  0x48   :  { %v76_v28 = vadd.f32 1e-05, %v75_v27 }
  0x4a   :  { %480 = vrsqrt.f32 %v76_v28 }
  0x57   :  { %v481_v33 = vpop.eup %480 }
  0x58   :  { %v78_v34 = vmul.f32 %v481_v33, %v54_v31 }
  0x5a   :  { %v82_v35 = vrot.slane %v78_v34, %v607_v32 }
  0x5c   :  { %v83_v37 = vmul.f32 %v82_v35, %v66_v16 }
  0x5e   :  { %v88_v38 = vadd.f32 %v405_v36, %v83_v37 }
  0x60   :  { %460 = vmatmul.mubr.msk.f32.vlgmr.msra.gmra.mxu0 %vm56_vm1, %v88_v38 }
 0x120   :  { %v190_v44 = vpop.f32.mrf.mxu0 }
 0x121   :  { %v199_v46 = vmul.f32 %v415_v43, %v190_v44  ;;  %v425_v43 = vld [vmem:[#allocation4 + $0x9] ss:$0 sm:$0xff] }
 0x122   :  { %v461_v47 = vpop.f32.mrf.mxu0 }
 0x123   :  { %v205_v48 = vadd.f32 %v416_v45, %v199_v46  ;;  %v426_v45 = vld [vmem:[#allocation6 + $0x60] ss:$0 sm:$0xff] }
 0x125   :  { %v206_v49 = vmax.f32 %v205_v48, 0.0 }
 0x127   :  { %v210_v50 = vsel %vm209_vm2, %v206_v49, 0.0 }
 0x128   :  { %v211_v51 = vrot.slane %v210_v50, 4 }
 0x12a   :  { %v212_v52 = vadd.f32 %v211_v51, %v210_v50  ;;  %v428_v51 = vld [vmem:[#allocation4 + $0xb] ss:$0 sm:$0xff] }
 0x12c   :  { %v213_v53 = vrot.slane %v212_v52, 2 }
 0x12e   :  { %v214_v54 = vadd.f32 %v213_v53, %v212_v52 }
 0x130   :  { %v215_v55 = vrot.slane %v214_v54, 1 }
 0x132   :  { %v216_v56 = vadd.f32 %v215_v55, %v214_v54 }
 0x134   :  { %v217_v57 = vmul.f32 0.125, %v216_v56 }
 0x136   :  { %v218_v58 = vsub.f32 %v206_v49, %v217_v57  ;;  %v427_v49 = vld [vmem:[#allocation4 + $0xa] ss:$0 sm:$0xff] }
 0x138   :  { %v219_v59 = vmul.f32 %v218_v58, %v218_v58 }
 0x13a   :  { %v220_v60 = vsel %vm209_vm2, %v219_v59, 0.0 }
 0x13b   :  { %v221_v61 = vrot.slane %v220_v60, 4 }
 0x13d   :  { %v222_v62 = vadd.f32 %v221_v61, %v220_v60 }
 0x13f   :  { %v223_v63 = vrot.slane %v222_v62, 2 }
 0x141   :  { %v224_v0 = vadd.f32 %v223_v63, %v222_v62 }
 0x143   :  { %v225_v1 = vrot.slane %v224_v0, 1 }
 0x145   :  { %v226_v2 = vadd.f32 %v225_v1, %v224_v0 }
 0x147   :  { %v227_v3 = vmul.f32 0.125, %v226_v2 }
 0x149   :  { %v228_v4 = vadd.f32 1e-05, %v227_v3 }
 0x14b   :  { %482 = vrsqrt.f32 %v228_v4 }
 0x158   :  { %v483_v6 = vpop.eup %482 }
 0x159   :  { %v230_v7 = vmul.f32 %v483_v6, %v207_v5 }
 0x15b   :  { %v234_v8 = vrot.slane %v230_v7, %v607_v32 }
 0x15d   :  { %v235_v10 = vmul.f32 %v234_v8, %v218_v58 }
 0x15f   :  { %v240_v11 = vadd.f32 %v417_v9, %v235_v10 }
 0x161   :  { %471 = vmatmul.mubr.msk.f32.vlgmr.msra.gmra.mxu1 %vm209_vm2, %v240_v11 }
 0x221   :  { %v326_v13 = vpop.f32.mrf.mxu1 }
 0x222   :  { %v335_v15 = vmul.f32 %v423_v12, %v326_v13 }
 0x223   :  { %v472_v16 = vpop.f32.mrf.mxu1 }
 0x224   :  { %v341_v17 = vadd.f32 %v424_v14, %v335_v15 }
 0x226   :  { %v342_v18 = vmax.f32 %v341_v17, 0.0 }
 0x228   :  { %v345_v19 = vsel %vm56_vm1, %v342_v18, 0.0 }
 0x229   :  { %v346_v20 = vrot.slane %v345_v19, 4 }
 0x22b   :  { %v347_v21 = vadd.f32 %v346_v20, %v345_v19 }
 0x22d   :  { %v348_v22 = vrot.slane %v347_v21, 2 }
 0x22f   :  { %v349_v23 = vadd.f32 %v348_v22, %v347_v21 }
 0x231   :  { %v350_v24 = vrot.slane %v349_v23, 1 }
 0x233   :  { %v351_v25 = vadd.f32 %v350_v24, %v349_v23 }
 0x235   :  { %v352_v26 = vmul.f32 0.125, %v351_v25 }
 0x237   :  { %v353_v27 = vsub.f32 %v342_v18, %v352_v26 }
 0x239   :  { %v354_v28 = vmul.f32 %v353_v27, %v353_v27 }
 0x23b   :  { %v355_v29 = vsel %vm56_vm1, %v354_v28, 0.0 }
 0x23c   :  { %v356_v30 = vrot.slane %v355_v29, 4 }
 0x23e   :  { %v357_v31 = vadd.f32 %v356_v30, %v355_v29 }
 0x240   :  { %v358_v33 = vrot.slane %v357_v31, 2 }
 0x242   :  { %v359_v34 = vadd.f32 %v358_v33, %v357_v31 }
 0x244   :  { %v360_v35 = vrot.slane %v359_v34, 1 }
 0x246   :  { %v361_v36 = vadd.f32 %v360_v35, %v359_v34 }
 0x248   :  { %v362_v37 = vmul.f32 0.125, %v361_v36 }
 0x24a   :  { %v363_v38 = vadd.f32 1e-05, %v362_v37 }
 0x24c   :  { %484 = vrsqrt.f32 %v363_v38 }
 0x259   :  { %v485_v40 = vpop.eup %484 }
 0x25a   :  { %v365_v41 = vmul.f32 %v485_v40, %v343_v39 }
 0x25c   :  { %v369_v42 = vrot.slane %v365_v41, %v607_v32 }
 0x25e   :  { %v370_v44 = vmul.f32 %v369_v42, %v353_v27 }
 0x260   :  { %v375_v46 = vadd.f32 %v425_v43, %v370_v44 }
 0x262   :  { %v381_v47 = vmul.f32 %v426_v45, %v375_v46 }
 0x264   :  { %v382_v48 = vsel %vm56_vm1, %v381_v47, 0.0 }
 0x265   :  { %383 = vadd.xlane.f32.xlu0 %v382_v48 }
 0x2ee   :  { %v384_v50 = vpop.xlane.xlu0 %383 }
 0x2ef   :  { %v390_v52 = vmul.f32 %v427_v49, %v384_v50 }
 0x2f1   :  { %v396_v53 = vadd.f32 %v428_v51, %v390_v52 }
 0x2f3   :  { %398 = vst.msk [vmem:[%s632_s3] sm:$0xff] %vm397_vm3, %v396_v53 }
 0x2f4   :  { %403 = vsyncpa [#allocation3], 1 }
 0x2f5   :  { %404 = vsyncpa [#allocation5], 1 }

</bundles_post_ra>
